<compile_context>
chip_gen: v7x
topology: tpu7x:2x2x1
jax: 0.10.0
libtpu: 0.0.40
codegen_flags: <defaults>
</compile_context>

<pallas_src>
import math
from functools import partial

import jax
import jax.numpy as jnp
from jax.experimental import pallas as pl
from jax.experimental.pallas import tpu as pltpu

# bf16 operands on the MXU (~2x rate on v6e/v7x, half HBM/VMEM traffic);
# accumulation / softmax / LayerNorm statistics stay f32.
_MXU_DTYPE = jnp.bfloat16

_ROW_BLOCK = 512                  # node-row tile for projection / norm kernels (multiple of 8)
_DST_BLOCK = 256                  # dst-row tile for the attention kernel (multiple of 8)
_VMEM_LIMIT = 32 * 1024 * 1024    # raise v5e's 16 MiB default scoped VMEM limit


def _gelu_exact(x):
    # matches torch.nn.functional.gelu default (erf form)
    return 0.5 * x * (1.0 + jax.lax.erf(x * jnp.float32(1.0 / math.sqrt(2.0))))


# ----------------------------- Pallas kernels -----------------------------

def _linear_kernel(x_ref, w_ref, b_ref, o_ref, *, activation):
    y = jnp.dot(x_ref[...].astype(w_ref.dtype), w_ref[...],
                preferred_element_type=jnp.float32) + b_ref[...]
    if activation == "gelu":
        y = _gelu_exact(y)
    o_ref[...] = y.astype(o_ref.dtype)


def linear(x, w, b, activation=None, out_dtype=_MXU_DTYPE, block_m=_ROW_BLOCK):
    """y = x @ w + b (optionally gelu), row-tiled.  x:(N,Din) w:(Din,Dout) b:(Dout,)."""
    N, Din = x.shape
    Dout = w.shape[1]
    bm = N if N <= block_m else block_m
    return pl.pallas_call(
        partial(_linear_kernel, activation=activation),
        out_shape=jax.ShapeDtypeStruct((N, Dout), out_dtype),
        grid=(pl.cdiv(N, bm),),
        in_specs=[pl.BlockSpec((bm, Din), lambda i: (i, 0)),
                  pl.BlockSpec((Din, Dout), lambda i: (0, 0)),
                  pl.BlockSpec((1, Dout), lambda i: (0, 0))],
        out_specs=pl.BlockSpec((bm, Dout), lambda i: (i, 0)),
        compiler_params=pltpu.CompilerParams(
            dimension_semantics=("parallel",),
            vmem_limit_bytes=_VMEM_LIMIT),
    )(x, w, b.reshape(1, Dout))


def _hgt_attn_kernel(q_ref, kv_ref, mask_ref, o_ref, acc_ref, *, n_heads, d_k):
    """One dst-row tile x one edge type.  Grid = (dst_tiles [parallel], n_etypes [arbitrary]).

    The accumulator over edge types lives in a VMEM f32 scratch (no HBM round trips);
    the output block is written once, at the last edge type.
    """
    e = pl.program_id(1)
    n_hid = n_heads * d_k

    @pl.when(e == 0)
    def _():
        acc_ref[...] = jnp.zeros_like(acc_ref)

    q = q_ref[...]                           # (bd, n_hid)   bf16
    kv = kv_ref[0]                           # (S, 2*n_hid)  bf16, relation matrices pre-folded
    keep = mask_ref[0] != 0                  # (bd, S)  int8 adjacency -> bool, computed once
    neg = jnp.float32(-1e30)

    outs = []
    for h in range(n_heads):
        lo = h * d_k
        qh = q[:, lo:lo + d_k]
        kh = kv[:, lo:lo + d_k]
        vh = kv[:, n_hid + lo:n_hid + lo + d_k]
        # per-edge q . k over all (dst, src) pairs of this edge type, masked
        s = jax.lax.dot_general(qh, kh, (((1,), (1,)), ((), ())),
                                preferred_element_type=jnp.float32)       # (bd, S)
        s = jnp.where(keep, s, neg)
        m = jnp.max(s, axis=-1, keepdims=True)
        m = jnp.where(m <= jnp.float32(-1e29), jnp.float32(0.0), m)       # rows w/o in-edges
        p = jnp.where(keep, jnp.exp(s - m), jnp.float32(0.0))
        den = jnp.sum(p, axis=-1, keepdims=True)
        den = jnp.where(den > jnp.float32(0.0), den, jnp.float32(1.0))
        attn = p * pl.reciprocal(den, approx=False)                       # exact edge_softmax(dst)
        outs.append(jnp.dot(attn.astype(kv.dtype), vh,
                            preferred_element_type=jnp.float32))          # u_mul_e + sum
    acc_ref[...] += jnp.concatenate(outs, axis=-1)

    @pl.when(e == pl.num_programs(1) - 1)
    def _():
        o_ref[...] = acc_ref[...]


def hgt_attention(q_dst, kv_stack, mask_stack, *, n_heads, d_k, block_d=_DST_BLOCK):
    """q_dst:(Nd,n_hid) bf16, kv_stack:(E,S,2*n_hid) bf16, mask_stack:(E,Nd,S) int8.

    Returns the per-dst-type message sum over all E edge types, shape (Nd, n_hid) f32.
    """
    Nd, n_hid = q_dst.shape
    E, S, two_hid = kv_stack.shape
    bd = Nd if Nd <= block_d else block_d
    # TODO(synk): for very large graphs, also tile the src axis (online softmax + nonzero-tile
    # bitmap via scalar prefetch to skip all-zero tiles) so the (S, 2*n_hid) kv slab and the
    # (bd, S) score matrices stay bounded under v7x's 64 MiB VMEM.
    return pl.pallas_call(
        partial(_hgt_attn_kernel, n_heads=n_heads, d_k=d_k),
        out_shape=jax.ShapeDtypeStruct((Nd, n_hid), jnp.float32),
        grid=(pl.cdiv(Nd, bd), E),
        in_specs=[pl.BlockSpec((bd, n_hid), lambda i, e: (i, 0)),         # q (dst rows, resident)
                  pl.BlockSpec((1, S, two_hid), lambda i, e: (e, 0, 0)),  # hoisted kv per etype
                  pl.BlockSpec((1, bd, S), lambda i, e: (e, i, 0))],      # int8 adjacency
        out_specs=pl.BlockSpec((bd, n_hid), lambda i, e: (i, 0)),
        scratch_shapes=[pltpu.VMEM((bd, n_hid), jnp.float32)],
        compiler_params=pltpu.CompilerParams(
            dimension_semantics=("parallel", "arbitrary"),
            vmem_limit_bytes=_VMEM_LIMIT),
    )(q_dst, kv_stack, mask_stack)


def _a_skip_norm_kernel(alpha_ref, t_ref, w_ref, b_ref, h_ref, g_ref, be_ref, o_ref,
                        *, inv_cnt):
    alpha = alpha_ref[0]
    t = t_ref[...] * jnp.float32(inv_cnt)                                 # cross_reducer='mean'
    trans = jnp.dot(t.astype(w_ref.dtype), w_ref[...],
                    preferred_element_type=jnp.float32) + b_ref[...]
    # TODO(synk): nn.Dropout(p=0.2) treated as identity (inference / deterministic semantics).
    x = trans * alpha + h_ref[...].astype(jnp.float32) * (jnp.float32(1.0) - alpha)
    mu = jnp.mean(x, axis=-1, keepdims=True)
    var = jnp.mean((x - mu) * (x - mu), axis=-1, keepdims=True)
    xn = (x - mu) * jax.lax.rsqrt(var + jnp.float32(1e-5))
    o_ref[...] = (xn * g_ref[...] + be_ref[...]).astype(o_ref.dtype)


def a_skip_norm(alpha, t, w, b, h_prev, gamma, beta, inv_cnt, block_m=_ROW_BLOCK):
    """fused: LayerNorm( a_linear(t * inv_cnt) * alpha + h_prev * (1 - alpha) ), bf16 out."""
    N, D = t.shape
    bm = N if N <= block_m else block_m
    return pl.pallas_call(
        partial(_a_skip_norm_kernel, inv_cnt=inv_cnt),
        out_shape=jax.ShapeDtypeStruct((N, D), _MXU_DTYPE),
        grid=(pl.cdiv(N, bm),),
        in_specs=[pl.BlockSpec(memory_space=pltpu.MemorySpace.SMEM),
                  pl.BlockSpec((bm, D), lambda i: (i, 0)),
                  pl.BlockSpec((D, D), lambda i: (0, 0)),
                  pl.BlockSpec((1, D), lambda i: (0, 0)),
                  pl.BlockSpec((bm, D), lambda i: (i, 0)),
                  pl.BlockSpec((1, D), lambda i: (0, 0)),
                  pl.BlockSpec((1, D), lambda i: (0, 0))],
        out_specs=pl.BlockSpec((bm, D), lambda i: (i, 0)),
        compiler_params=pltpu.CompilerParams(
            dimension_semantics=("parallel",),
            vmem_limit_bytes=_VMEM_LIMIT),
    )(jnp.reshape(alpha, (1,)).astype(jnp.float32), t, w, b.reshape(1, D),
      h_prev, gamma.reshape(1, D), beta.reshape(1, D))


# ----------------------------- Parameter / graph preparation (one-time) -----------------------------

def _block_diag_heads(r):
    """(H, dk, dk) per-head matrices -> (H*dk, H*dk) block-diagonal matrix."""
    H, dk, _ = r.shape
    eye = jnp.eye(H, dtype=r.dtype)
    return jnp.einsum('hij,hg->higj', r, eye).reshape(H * dk, H * dk)


def prepare_hgt_params(params, graph, n_heads, n_hid):
    """Fold relation matrices (and pri/sqrt(d_k)) into the K/V projection weights and cast
    all MXU-side weights to bf16.  Depends only on parameters -> run once, outside forward."""
    d_k = n_hid // n_heads
    sqrt_dk = math.sqrt(d_k)
    node_dict, edge_dict = graph["node_dict"], graph["edge_dict"]

    prepared = {
        "adapt_w": [w.astype(_MXU_DTYPE) for w in params["adapt_w"]],
        "adapt_b": params["adapt_b"],
        "out_w": [w.astype(_MXU_DTYPE) for w in params["out_w"]],
        "out_b": params["out_b"],
        "layers": [],
    }
    for lp in params["layers"]:
        new_lp = {
            "q_w": [w.astype(_MXU_DTYPE) for w in lp["q_w"]],
            "q_b": lp["q_b"],
            "a_w": [w.astype(_MXU_DTYPE) for w in lp["a_w"]],
            "a_b": lp["a_b"],
            "norm_g": lp["norm_g"],
            "norm_b": lp["norm_b"],
            "skip": lp["skip"],
            "kv_w": {}, "kv_b": {},
        }
        for (srctype, etype, dsttype) in graph["canonical_etypes"]:
            e_id = edge_dict[etype]
            s_id = node_dict[srctype]
            pri = lp["relation_pri"][e_id]                                     # (H,)
            ra = lp["relation_att"][e_id] * (pri / sqrt_dk)[:, None, None]     # (H, dk, dk)
            rm = lp["relation_msg"][e_id]                                      # (H, dk, dk)
            bd_ra = _block_diag_heads(ra)
            bd_rm = _block_diag_heads(rm)
            w_kv = jnp.concatenate([lp["k_w"][s_id] @ bd_ra,
                                    lp["v_w"][s_id] @ bd_rm], axis=1)          # (n_hid, 2*n_hid)
            b_kv = jnp.concatenate([lp["k_b"][s_id] @ bd_ra,
                                    lp["v_b"][s_id] @ bd_rm], axis=0)          # (2*n_hid,)
            new_lp["kv_w"][etype] = w_kv.astype(_MXU_DTYPE)
            new_lp["kv_b"][etype] = b_kv
        prepared["layers"].append(new_lp)
    return prepared


def prepare_graph(node_dict, edge_dict, canonical_etypes, masks, num_nodes):
    """Group edge types by destination type; stack their int8 masks padded to a shared,
    lane-dense src length S (multiple of 128).  Runs once per graph."""
    by_dst = {}
    for (srctype, etype, dsttype) in canonical_etypes:
        by_dst.setdefault(dsttype, []).append((srctype, etype))
    attn = {}
    for dsttype, srcs in by_dst.items():
        max_ns = max(num_nodes[s] for s, _ in srcs)
        S = max(128, ((max_ns + 127) // 128) * 128)
        mask_stack = jnp.stack([
            jnp.pad(masks[etype].astype(jnp.int8), ((0, 0), (0, S - num_nodes[s])))
            for s, etype in srcs])                                             # (E, Nd, S) int8
        attn[dsttype] = {"srcs": srcs, "S": S, "mask": mask_stack}
    return {"node_dict": node_dict, "edge_dict": edge_dict,
            "canonical_etypes": canonical_etypes, "attn": attn}


# ----------------------------- Model (glue in plain JAX) -----------------------------

def hgt_layer_forward(lp, h, graph, n_heads, d_k):
    node_dict = graph["node_dict"]
    n_hid = n_heads * d_k

    # Q projection per (dst) node type, lane-dense (N, n_hid), bf16.
    q = {nt: linear(h[nt], lp["q_w"][nid], lp["q_b"][nid])
         for nt, nid in node_dict.items()}

    new_h = {}
    for dsttype, spec in graph["attn"].items():
        srcs, S = spec["srcs"], spec["S"]
        # Hoisted K/V projection: exactly once per (layer, edge type), then padded + stacked
        # so all edge types targeting this dst type run in one attention pallas_call.
        kv_stack = jnp.stack([
            jnp.pad(linear(h[srctype], lp["kv_w"][etype], lp["kv_b"][etype]),
                    ((0, S - h[srctype].shape[0]), (0, 0)))
            for srctype, etype in srcs])                                       # (E, S, 2*n_hid) bf16
        agg = hgt_attention(q[dsttype], kv_stack, spec["mask"],
                            n_heads=n_heads, d_k=d_k)                          # (Nd, n_hid) f32
        nid = node_dict[dsttype]
        alpha = jax.nn.sigmoid(lp["skip"][nid])
        new_h[dsttype] = a_skip_norm(alpha, agg, lp["a_w"][nid], lp["a_b"][nid],
                                     h[dsttype], lp["norm_g"][nid], lp["norm_b"][nid],
                                     inv_cnt=1.0 / float(len(srcs)))
    # Node types with no incoming edge types: zero messages, plain skip/norm path.
    for ntype, nid in node_dict.items():
        if ntype not in new_h:
            alpha = jax.nn.sigmoid(lp["skip"][nid])
            zeros = jnp.zeros((h[ntype].shape[0], n_hid), jnp.float32)
            new_h[ntype] = a_skip_norm(alpha, zeros, lp["a_w"][nid], lp["a_b"][nid],
                                       h[ntype], lp["norm_g"][nid], lp["norm_b"][nid],
                                       inv_cnt=1.0)
    return new_h


def hgt_forward(params, graph, x_author, x_institution, x_paper,
                n_layers, n_heads, n_hid):
    d_k = n_hid // n_heads
    h = {
        "author": linear(x_author, params["adapt_w"][0], params["adapt_b"][0], activation="gelu"),
        "institution": linear(x_institution, params["adapt_w"][1], params["adapt_b"][1], activation="gelu"),
        "paper": linear(x_paper, params["adapt_w"][2], params["adapt_b"][2], activation="gelu"),
    }
    for i in range(n_layers):
        h = hgt_layer_forward(params["layers"][i], h, graph, n_heads, d_k)
    # TODO(synk): n_out < 128 lanes makes these stores masked/partial; pad n_out to 128 or batch
    # the three node-type projections into one lane-dense call if the output head matters at scale.
    out_a = linear(h["author"], params["out_w"][0], params["out_b"][0], out_dtype=jnp.float32)
    out_i = linear(h["institution"], params["out_w"][1], params["out_b"][1], out_dtype=jnp.float32)
    out_p = linear(h["paper"], params["out_w"][2], params["out_b"][2], out_dtype=jnp.float32)
    return out_a, out_i, out_p


# ----------------------------- Deterministic init -----------------------------

def init_hgt_params(key, n_types, n_rels, n_inp, n_hid, n_out, n_layers, n_heads):
    d_k = n_hid // n_heads
    keys = iter(jax.random.split(key, 1024))

    def dense(din, dout):
        bound = 1.0 / math.sqrt(din)
        w = jax.random.uniform(next(keys), (din, dout), jnp.float32, -bound, bound)
        b = jax.random.uniform(next(keys), (dout,), jnp.float32, -bound, bound)
        return w, b

    adapt = [dense(n_inp, n_hid) for _ in range(n_types)]
    layers = []
    for _ in range(n_layers):
        lp = {"k_w": [], "k_b": [], "q_w": [], "q_b": [], "v_w": [], "v_b": [],
              "a_w": [], "a_b": [], "norm_g": [], "norm_b": []}
        for _ in range(n_types):
            for name in ("k", "q", "v", "a"):
                w, b = dense(n_hid, n_hid)
                lp[name + "_w"].append(w)
                lp[name + "_b"].append(b)
            lp["norm_g"].append(jnp.ones((n_hid,), jnp.float32))
            lp["norm_b"].append(jnp.zeros((n_hid,), jnp.float32))
        xav = math.sqrt(6.0 / (d_k + d_k))
        lp["relation_att"] = jax.random.uniform(next(keys), (n_rels, n_heads, d_k, d_k),
                                                jnp.float32, -xav, xav)
        lp["relation_msg"] = jax.random.uniform(next(keys), (n_rels, n_heads, d_k, d_k),
                                                jnp.float32, -xav, xav)
        lp["relation_pri"] = jnp.ones((n_rels, n_heads), jnp.float32)
        lp["skip"] = jnp.ones((n_types,), jnp.float32)
        layers.append(lp)
    outs = [dense(n_hid, n_out) for _ in range(n_types)]
    return {
        "adapt_w": [w for w, _ in adapt], "adapt_b": [b for _, b in adapt],
        "layers": layers,
        "out_w": [w for w, _ in outs], "out_b": [b for _, b in outs],
    }


# ----------------------------- Demo -----------------------------

if __name__ == "__main__":
    key = jax.random.PRNGKey(0)
    k_feat_a, k_feat_i, k_feat_p, k_params, k_g1, k_g2, k_g3, k_g4, k_g5 = jax.random.split(key, 9)

    # small synthetic heterogeneous graph (ogbn-mag style)
    NA, NI, NP = 16, 8, 24            # authors / institutions / papers
    n_inp, n_hid, n_out = 32, 32, 16
    n_layers, n_heads = 2, 4

    node_dict = {"author": 0, "institution": 1, "paper": 2}
    edge_dict = {"affiliated_with": 0, "writes": 1, "cites": 2,
                 "rev_affiliated_with": 3, "rev_writes": 4}
    canonical_etypes = [
        ("author", "affiliated_with", "institution"),
        ("author", "writes", "paper"),
        ("paper", "cites", "paper"),
        ("institution", "rev_affiliated_with", "author"),
        ("paper", "rev_writes", "author"),
    ]
    num_nodes = {"author": NA, "institution": NI, "paper": NP}
    # dense int8 adjacency masks: mask[dst, src] = 1 if edge exists
    # TODO(synk): at real graph scale add per-tile nonzero bitmaps (scalar prefetch) for tile skipping.
    masks = {
        "affiliated_with": jax.random.bernoulli(k_g1, 0.3, (NI, NA)).astype(jnp.int8),
        "writes":          jax.random.bernoulli(k_g2, 0.3, (NP, NA)).astype(jnp.int8),
        "cites":           jax.random.bernoulli(k_g3, 0.2, (NP, NP)).astype(jnp.int8),
        "rev_affiliated_with": jax.random.bernoulli(k_g4, 0.3, (NA, NI)).astype(jnp.int8),
        "rev_writes":      jax.random.bernoulli(k_g5, 0.3, (NA, NP)).astype(jnp.int8),
    }
    graph = prepare_graph(node_dict, edge_dict, canonical_etypes, masks, num_nodes)

    raw_params = init_hgt_params(k_params, len(node_dict), len(edge_dict),
                                 n_inp, n_hid, n_out, n_layers, n_heads)
    # One-time fold of relation matrices into the K/V projections + bf16 weight cast.
    params = prepare_hgt_params(raw_params, graph, n_heads, n_hid)
    params = jax.block_until_ready(params)

    x_author = jax.random.normal(k_feat_a, (NA, n_inp), jnp.float32)
    x_institution = jax.random.normal(k_feat_i, (NI, n_inp), jnp.float32)
    x_paper = jax.random.normal(k_feat_p, (NP, n_inp), jnp.float32)

    out_a, out_i, out_p = hgt_forward(params, graph, x_author, x_institution, x_paper,
                                      n_layers, n_heads, n_hid)
    jax.block_until_ready((out_a, out_i, out_p))

    assert out_a.shape == (NA, n_out)
    assert out_i.shape == (NI, n_out)
    assert out_p.shape == (NP, n_out)
    print("KERNEL_OK")
</pallas_src>

<mosaic_0001>
module attributes {stable_mosaic.version = 11 : i64} {
  func.func @_linear_kernel(%arg0: i32, %arg1: memref<16x32xf32, #tpu.memory_space<vmem>>, %arg2: memref<32x32xbf16, #tpu.memory_space<vmem>>, %arg3: memref<1x32xf32, #tpu.memory_space<vmem>>, %arg4: memref<16x32xbf16, #tpu.memory_space<vmem>>) attributes {dimension_semantics = [#tpu.dimension_semantics<parallel>], iteration_bounds = array<i64: 1>, scalar_prefetch = 0 : i64, scratch_operands = 0 : i64, tpu.core_type = #tpu.core_type<tc>, window_params = [{transform_indices = @transform_0, window_bounds = array<i64: 16, 32>}, {pipeline_mode = #tpu.pipeline_mode<synchronous>, transform_indices = @transform_1, window_bounds = array<i64: 32, 32>}, {pipeline_mode = #tpu.pipeline_mode<synchronous>, transform_indices = @transform_2, window_bounds = array<i64: 1, 32>}, {transform_indices = @transform_3, window_bounds = array<i64: 16, 32>}]} {
    %c0 = arith.constant 0 : index
    %c0_0 = arith.constant 0 : index
    %0 = vector.load %arg1[%c0, %c0_0] : memref<16x32xf32, #tpu.memory_space<vmem>>, vector<16x32xf32>
    %1 = arith.truncf %0 : vector<16x32xf32> to vector<16x32xbf16>
    %c0_1 = arith.constant 0 : index
    %c0_2 = arith.constant 0 : index
    %2 = vector.load %arg2[%c0_1, %c0_2] : memref<32x32xbf16, #tpu.memory_space<vmem>>, vector<32x32xbf16>
    %cst = arith.constant dense<0.000000e+00> : vector<16x32xf32>
    %3 = tpu.matmul %1, %2, %cst {dimension_numbers = #tpu.dot_dimension_numbers<[1], [0], [0], [1], [0, 0, 1, 1], [], []>} : vector<16x32xbf16>, vector<32x32xbf16>, vector<16x32xf32> -> vector<16x32xf32>
    %c0_3 = arith.constant 0 : index
    %c0_4 = arith.constant 0 : index
    %4 = vector.load %arg3[%c0_3, %c0_4] : memref<1x32xf32, #tpu.memory_space<vmem>>, vector<1x32xf32>
    %5 = vector.broadcast %4 : vector<1x32xf32> to vector<16x32xf32>
    %6 = arith.addf %3, %5 : vector<16x32xf32>
    %cst_5 = arith.constant 5.000000e-01 : f32
    %7 = vector.broadcast %cst_5 : f32 to vector<16x32xf32>
    %8 = arith.mulf %7, %6 : vector<16x32xf32>
    %cst_6 = arith.constant 0.707106769 : f32
    %9 = vector.broadcast %cst_6 : f32 to vector<16x32xf32>
    %10 = arith.mulf %6, %9 : vector<16x32xf32>
    %11 = math.erf %10 : vector<16x32xf32>
    %cst_7 = arith.constant 1.000000e+00 : f32
    %12 = vector.broadcast %cst_7 : f32 to vector<16x32xf32>
    %13 = arith.addf %12, %11 : vector<16x32xf32>
    %14 = arith.mulf %8, %13 : vector<16x32xf32>
    %15 = arith.truncf %14 : vector<16x32xf32> to vector<16x32xbf16>
    %c0_8 = arith.constant 0 : index
    %c0_9 = arith.constant 0 : index
    %16 = vector.load %arg4[%c0_8, %c0_9] : memref<16x32xbf16, #tpu.memory_space<vmem>>, vector<16x32xbf16>
    tpu.vector_store %arg4[%c0_8, %c0_9], %15 {strides = array<i32>} : memref<16x32xbf16, #tpu.memory_space<vmem>>, vector<16x32xbf16>,
    return
  }
  func.func @transform_0(%arg0: i32) -> (i32, i32) {
    %c0_i32 = arith.constant 0 : i32
    %c0_i32_0 = arith.constant 0 : i32
    return %arg0, %c0_i32 : i32, i32
  }
  func.func @transform_1(%arg0: i32) -> (i32, i32) {
    %c0_i32 = arith.constant 0 : i32
    %c0_i32_0 = arith.constant 0 : i32
    %c0_i32_1 = arith.constant 0 : i32
    return %c0_i32, %c0_i32_0 : i32, i32
  }
  func.func @transform_2(%arg0: i32) -> (i32, i32) {
    %c0_i32 = arith.constant 0 : i32
    %c0_i32_0 = arith.constant 0 : i32
    %c0_i32_1 = arith.constant 0 : i32
    return %c0_i32, %c0_i32_0 : i32, i32
  }
  func.func @transform_3(%arg0: i32) -> (i32, i32) {
    %c0_i32 = arith.constant 0 : i32
    %c0_i32_0 = arith.constant 0 : i32
    return %arg0, %c0_i32 : i32, i32
  }
}

</mosaic_0001>

<bundles_post_ra>
// kernel: tpu_custom_call.1
= control target key start
LH: loop header
LB: loop body
LE: loop exit
PB: predicated region body
PF: predicated region fallthrough
CT: control target
= control target key end

     0   :  { %8 = vsyncpa [#allocation3], 0  ;;  %s334_s0 = inlined_call_operand.hbm [shape: f32[16,32], index: 0, kind: input, shape index: {}]   ;;  %s335_s1 = inlined_call_operand.hbm [shape: bf16[32,32], index: 1, kind: input, shape index: {}]   ;;  %s336_s2 = inlined_call_operand.vmem [shape: f32[1,32], index: 2, kind: input, shape index: {}]   ;;  %s337_s3 = inlined_call_operand.hbm [shape: bf16[16,32], index: 3, kind: output, shape index: {}]  }
   0x1   :  { %9 = vsyncpa [#allocation6], 0 }
   0x2   :  { %10 = vsyncpa [#allocation4], 0  ;;  %s260_s12 = smov [#allocation2]   ;;  %s188_s16 = scalar_lea.hbm %s334_s0, 256 }
   0x3   :  { %s16_s13 = sshll.u32 %s260_s12, 4  ;;  %p189_p0 = scmp.ne.s32.totalorder %s334_s0, %s188_s16  ;;  %s17_s13 = int_to_ptr.vmem [resolvable:$true] %s16_s13 }
   0x4   :  { %p192_p1 = scmp.lt.u32.totalorder %s188_s16, %s334_s0 }
   0x6   :  { %p194_p2 = pnand %p192_p1, %p189_p0 }
   0x8   :  { %197 = shalt.err (!%p194_p2)
}
   0x9   :  { %s198_s21 = scalar_lea.vmem %s17_s13, 256  ;;  %p203_p4 = scmp.lt.s32.totalorder %s17_s13, %s17_s13 }
   0xa   :  { %p199_p3 = scmp.ne.s32.totalorder %s17_s13, %s198_s21  ;;  %p204_p5 = scmp.lt.s32.totalorder %s198_s21, %s198_s21 }
   0xc   :  { %p205_p6 = por %p204_p5, %p203_p4 }
   0xe   :  { %p206_p7 = pnand %p205_p6, %p199_p3 }
  0x10   :  { %209 = shalt.err (!%p206_p7)
}
  0x11   :  { %s261_s22 = smov 128   ;;  %s262_s23 = smov 8  }
  0x12   :  { %22 = dma.hbm_to_vmem [thread:$0]  %s334_s0, 256, %s17_s13, [#allocation3], %s261_s22, %s261_s22, %s262_s23  }
  0x13   :  { %s263_s26 = smov [#allocation5]   ;;  %s210_s30 = scalar_lea.hbm %s335_s1, 256 }
  0x14   :  { %s28_s27 = sshll.u32 %s263_s26, 4  ;;  %p211_p8 = scmp.ne.s32.totalorder %s335_s1, %s210_s30  ;;  %s29_s27 = int_to_ptr.vmem [resolvable:$true] %s28_s27 }
  0x15   :  { %p214_p9 = scmp.lt.u32.totalorder %s210_s30, %s335_s1 }
  0x17   :  { %p216_p10 = pnand %p214_p9, %p211_p8 }
  0x19   :  { %219 = shalt.err (!%p216_p10)
}
  0x1a   :  { %s220_s8 = scalar_lea.vmem %s29_s27, 256  ;;  %p225_p12 = scmp.lt.s32.totalorder %s29_s27, %s29_s27 }
  0x1b   :  { %p221_p11 = scmp.ne.s32.totalorder %s29_s27, %s220_s8  ;;  %p226_p13 = scmp.lt.s32.totalorder %s220_s8, %s220_s8 }
  0x1d   :  { %p227_p0 = por %p226_p13, %p225_p12 }
  0x1f   :  { %p228_p1 = pnand %p227_p0, %p221_p11 }
  0x21   :  { %231 = shalt.err (!%p228_p1)
}
  0x22   :  { %s264_s0 = smov 64   ;;  %s265_s9 = smov 4  }
  0x23   :  { %34 = dma.hbm_to_vmem [thread:$0]  %s335_s1, 256, %s29_s27, [#allocation6], %s264_s0, %s264_s0, %s265_s9  }
  0x24   :  { %254 = dma.done.wait [#allocation3], 256  }
  0x25   :  { %255 = vsyncadd [#allocation3], 4294967040 }
  0x26   :  { %256 = dma.done.wait [#allocation6], 256  }
  0x27   :  { %257 = vsyncadd [#allocation6], 4294967040  ;;  %v266_v0 = vmov 0.0   ;;  %vm267_vm0 = vmmov 0   ;;  %v182_v1 = vld [vmem:[#allocation5] sm:$0xff]   ;;  %v183_v2 = vld [vmem:[#allocation5 + $0x8] sm:$0xff]  }
  0x28   :  { %165 = vmatprep.subr.bf16.mxu0 %v266_v0  ;;  %169 = vmatprep.mubr.msk.bf16.mxu0 %vm267_vm0, %v266_v0  ;;  %v44_v3 = vld [vmem:[#allocation2] sm:$0xff]  ;;  %v45_v4 = vld [vmem:[#allocation2 + $0x8] sm:$0xff]  ;;  %vm70_vm1 = vcmask 261120   ;;  %vm133_vm2 = vcmask 257024   ;;  %s268_s13 = smov [#allocation7]  }
  0x29   :  { %166 = vmatpush3.bf16.msra.mxu0 %v182_v1  ;;  %v46_v5 = vpack.c.bf16 %v45_v4, %v44_v3  ;;  %v154_v6 = vld [vmem:[%s336_s2] ss:$0 sm:$0xff]  ;;  %s141_s2 = sshll.u32 %s268_s13, 4  ;;  %s142_s2 = int_to_ptr.vmem [resolvable:$true] %s141_s2 }
  0x2a   :  { %167 = vmatprep.subr.bf16.mxu0 %v266_v0  ;;  %s232_s14 = scalar_lea.vmem %s142_s2, 128  ;;  %p237_p3 = scmp.lt.s32.totalorder %s142_s2, %s142_s2 }
  0x2b   :  { %p233_p2 = scmp.ne.s32.totalorder %s142_s2, %s232_s14  ;;  %p238_p4 = scmp.lt.s32.totalorder %s232_s14, %s232_s14 }
  0x2d   :  { %168 = vmatpush3.bf16.msra.mxu0 %v183_v2  ;;  %p239_p5 = por %p238_p4, %p237_p3 }
  0x2f   :  { %p240_p6 = pnand %p239_p5, %p233_p2 }
  0x30   :  { %170 = vmatmul.mubr.msk.bf16.vlgmr.msra.gmra.mrb[0].mxu0 %vm70_vm1, %v46_v5 }
 0x103   :  { %v108_v7 = vpop.f32.mrb[0].mxu0 }
 0x104   :  { %v109_v8 = vadd.f32 %v154_v6, %v108_v7  ;;  %v171_v9 = vpop.f32.mrb[1].mxu0 }
 0x105   :  { %v111_v10 = vpop.f32.mrb[2].mxu0 }
 0x106   :  { %v117_v11 = vmul.f32 0.70710677, %v109_v8  ;;  %v112_v12 = vadd.f32 %v154_v6, %v111_v10  ;;  %v172_v13 = vpop.f32.mrb[3].mxu0  ;;  %v115_v16 = vmul.f32 0.5, %v109_v8 }
 0x108   :  { %184 = verf.f32 %v117_v11  ;;  %v118_v14 = vmul.f32 0.70710677, %v112_v12  ;;  %v116_v20 = vmul.f32 0.5, %v112_v12 }
 0x10a   :  { %186 = verf.f32 %v118_v14 }
 0x112   :  { %v185_v15 = vpop.eup %184 }
 0x113   :  { %v121_v17 = vadd.f32 1.0, %v185_v15 }
 0x114   :  { %v187_v18 = vpop.eup %186 }
 0x115   :  { %v123_v19 = vmul.f32 %v121_v17, %v115_v16  ;;  %v122_v21 = vadd.f32 1.0, %v187_v18 }
 0x117   :  { %v160_v22 = vpack.c.bf16 %v123_v19, %v123_v19  ;;  %v124_v23 = vmul.f32 %v122_v21, %v116_v20 }
 0x119   :  { %v161_v24 = vpack.c.bf16 %v124_v23, %v124_v23  ;;  %134 = vst.msk [vmem:[#allocation7] sm:$0xf] %vm133_vm2, %v160_v22 }
 0x11b   :  { %135 = vst.msk [vmem:[#allocation7 + $0x4] sm:$0xf] %vm133_vm2, %v161_v24 }
 0x11c   :  { %243 = shalt.err (!%p240_p6)
}
 0x11d   :  { %s244_s17 = scalar_lea.hbm %s337_s3, 128 }
 0x11e   :  { %p245_p7 = scmp.ne.s32.totalorder %s337_s3, %s244_s17  ;;  %p248_p8 = scmp.lt.u32.totalorder %s244_s17, %s337_s3 }
 0x120   :  { %p250_p9 = pnand %p248_p8, %p245_p7 }
 0x122   :  { %253 = shalt.err (!%p250_p9)
}
 0x123   :  { %147 = dma.vmem_to_hbm [thread:$0]  %s142_s2, 128, %s337_s3, [#allocation4], %s264_s0, %s264_s0, %s265_s9  }
 0x124   :  { %258 = dma.done.wait [#allocation4], 128  }
 0x125   :  { %259 = vsyncadd [#allocation4], 4294967168 }
 0x126   :  { %151 = vsyncpa [#allocation3], 1 }
 0x127   :  { %152 = vsyncpa [#allocation6], 1 }
 0x128   :  { %153 = vsyncpa [#allocation4], 1 }

</bundles_post_ra>
